<compile_context>
chip_gen: v5e
topology: v5e:2x2
jax: 0.10.0
libtpu: 0.0.40
codegen_flags: <defaults>
</compile_context>

<pallas_src>
import math

import jax
import jax.numpy as jnp
from jax.experimental import pallas as pl
from jax.experimental.pallas import tpu as pltpu


def _make_kernel(R, KD, k, Wo, L):
    """Builds the per-batch kernel body. Static params are baked in via closure."""

    def kernel(x_ref, w_ref, b_ref, m_ref, phi_ref):
        # x_ref:   (R, KD, F)   F = (Ho + k - 1) * Wo,  KD = Cin*k  (index = c*k + dx)
        # w_ref:   (k, Cout, KD) per-dy weight slabs, columns ordered c*k + dx
        # b_ref:   (R, Cout, 1)
        # m_ref:   (Cout, L)
        # phi_ref: (R, Cout, L)

        # ||x||_2 over the rotating dim — computed once over the whole padded
        # slab (F columns), then windowed per dy, instead of recomputed k times.
        xs = [x_ref[r] for r in range(R)]                     # each (KD, F)
        sq = xs[0] * xs[0]
        for r in range(1, R):
            sq = sq + xs[r] * xs[r]
        nrm = jnp.sqrt(sq)                                    # (KD, F)

        acc = None
        for dy in range(k):
            start = dy * Wo  # static lane offset: shifting by one output row per dy
            # Fuse all R rotation slices + the norm image into one MXU stream:
            # rhs columns are [slice_0 | slice_1 | ... | slice_{R-1} | norm].
            rhs = jnp.concatenate(
                [xv[:, start:start + L] for xv in xs]
                + [nrm[:, start:start + L]],
                axis=-1)                                      # (KD, (R+1)*L)
            part = jnp.dot(w_ref[dy], rhs,
                           preferred_element_type=jnp.float32)  # (Cout, (R+1)*L)
            acc = part if acc is None else acc + part

        bias = b_ref[...]                                     # (R, Cout, 1)
        phis = []
        for r in range(R):
            phi_r = acc[:, r * L:(r + 1) * L] + bias[r]       # (Cout, L)
            phis.append(phi_r)
            phi_ref[r] = phi_r
        chi = acc[:, R * L:]                                  # (Cout, L)

        sq = phis[0] * phis[0]
        for r in range(1, R):
            sq = sq + phis[r] * phis[r]
        m_ref[...] = 0.5 * jnp.sqrt(sq) + 0.5 * chi

    return kernel


def rotating_conv_pallas(xflat, w_dy, bias, *, k, Wo, L):
    """xflat: (B, R, KD, F), w_dy: (k, Cout, KD), bias: (R, Cout, 1)."""
    B, R, KD, F = xflat.shape
    Cout = w_dy.shape[1]
    kernel = _make_kernel(R, KD, k, Wo, L)

    m, phi = pl.pallas_call(
        kernel,
        out_shape=(jax.ShapeDtypeStruct((B, Cout, L), jnp.float32),
                   jax.ShapeDtypeStruct((B, R, Cout, L), jnp.float32)),
        grid_spec=pltpu.PrefetchScalarGridSpec(
            num_scalar_prefetch=0,
            grid=(B,),
            in_specs=[
                pl.BlockSpec((None, R, KD, F), lambda b: (b, 0, 0, 0)),
                pl.BlockSpec((k, Cout, KD), lambda b: (0, 0, 0)),
                pl.BlockSpec((R, Cout, 1), lambda b: (0, 0, 0)),
            ],
            out_specs=[
                pl.BlockSpec((None, Cout, L), lambda b: (b, 0, 0)),
                pl.BlockSpec((None, R, Cout, L), lambda b: (b, 0, 0, 0)),
            ],
        ),
        compiler_params=pltpu.CompilerParams(
            dimension_semantics=("parallel",),
            vmem_limit_bytes=32 * 1024 * 1024),
    )(xflat, w_dy, bias)
    return m, phi


def rotating_conv_upsample2d_forward(x, conv_weight, rotation_bias, *,
                                     kernel_size, padding, upsample):
    """x: (B, R, C_in, H, W) float32. Returns (m_bind, phi) in PyTorch layouts."""
    B, R, Cin, H, W = x.shape
    s, k, p = upsample, kernel_size, padding

    # nearest upsample by (s, s) — integer scale => same as repeat
    x_up = jnp.repeat(jnp.repeat(x, s, axis=-2), s, axis=-1)          # (B,R,Cin,Hu,Wu)
    Hu, Wu = H * s, W * s
    Ho = Hu + 2 * p - k + 1
    Wo = Wu + 2 * p - k + 1
    L = Ho * Wo

    # zero-pad once, then a k-fold dx-unfold (NOT a full k*k im2col) and flatten
    # (row, col) -> row*Wo + col so every (dy, dx) tap is a static lane window.
    xp = jnp.pad(x_up, ((0, 0), (0, 0), (0, 0), (p, p), (p, p)))      # (B,R,Cin,Hp,Wp)
    Hp = Hu + 2 * p
    xun = jnp.stack([xp[..., dx:dx + Wo] for dx in range(k)], axis=3)  # (B,R,Cin,k,Hp,Wo)
    KD = Cin * k
    F = Hp * Wo
    xflat = xun.reshape(B, R, KD, F)

    Cout = conv_weight.shape[0]
    # per-dy weight slabs with columns ordered (c, dx) to match KD = c*k + dx
    w_dy = jnp.transpose(conv_weight, (2, 0, 1, 3)).reshape(k, Cout, KD)
    bias = rotation_bias.reshape(R, Cout, 1)

    m_flat, phi_flat = rotating_conv_pallas(
        xflat.astype(jnp.float32), w_dy.astype(jnp.float32),
        bias.astype(jnp.float32), k=k, Wo=Wo, L=L)

    # outputs are already channel-major with a lane-dense flattened spatial axis:
    # only free reshapes back to the PyTorch NCHW layouts (no transposes).
    m_bind = m_flat.reshape(B, Cout, Ho, Wo)
    phi = phi_flat.reshape(B, R, Cout, Ho, Wo)
    return m_bind, phi


def reference_forward(x, conv_weight, rotation_bias, *, kernel_size, padding,
                      upsample):
    """Pure-JAX reference mirroring the PyTorch module exactly (f32, HIGHEST)."""
    B, R, Cin, H, W = x.shape
    s = upsample
    x_up = jnp.repeat(jnp.repeat(x, s, axis=-2), s, axis=-1)
    norm_x = jnp.sqrt(jnp.sum(x_up * x_up, axis=1))                   # (B, Cin, Hu, Wu)

    def conv(z):
        return jax.lax.conv_general_dilated(
            z, conv_weight, window_strides=(1, 1),
            padding=[(padding, padding), (padding, padding)],
            dimension_numbers=('NCHW', 'OIHW', 'NCHW'),
            precision=jax.lax.Precision.HIGHEST)

    Cout = conv_weight.shape[0]
    fw = conv(x_up.reshape(B * R, Cin, H * s, W * s))
    fw = fw.reshape(B, R, Cout, fw.shape[-2], fw.shape[-1])
    phi = fw + rotation_bias
    chi = conv(norm_x)
    norm_phi = jnp.sqrt(jnp.sum(phi * phi, axis=1))
    m_bind = 0.5 * norm_phi + 0.5 * chi
    return m_bind, phi


if __name__ == "__main__":
    # module hyper-parameters
    B, R, Cin, Cout = 2, 4, 4, 8
    H = W = 8
    kernel_size, stride, padding = 3, 2, 1   # stride => nearest-upsample factor

    key = jax.random.PRNGKey(0)
    kx, kw, kb = jax.random.split(key, 3)

    fan_in = Cin * kernel_size * kernel_size
    bound = 1.0 / math.sqrt(fan_in)
    conv_weight = jax.random.uniform(
        kw, (Cout, Cin, kernel_size, kernel_size),
        minval=-bound, maxval=bound, dtype=jnp.float32)
    rotation_bias = jax.random.uniform(
        kb, (1, R, Cout, 1, 1), minval=-bound, maxval=bound, dtype=jnp.float32)
    x = jax.random.normal(kx, (B, R, Cin, H, W), dtype=jnp.float32)

    m_bind, phi = rotating_conv_upsample2d_forward(
        x, conv_weight, rotation_bias,
        kernel_size=kernel_size, padding=padding, upsample=stride)
    jax.block_until_ready((m_bind, phi))

    m_ref, phi_ref = reference_forward(
        x, conv_weight, rotation_bias,
        kernel_size=kernel_size, padding=padding, upsample=stride)

    assert m_bind.shape == (B, Cout, H * stride, W * stride)
    assert phi.shape == (B, R, Cout, H * stride, W * stride)
    # Kernel matmuls run at default MXU precision (bf16 passes, f32 accumulate)
    # vs the f32 HIGHEST reference; values are O(1) so 2e-2 is a tight check.
    assert jnp.allclose(m_bind, m_ref, atol=2e-2, rtol=2e-2)
    assert jnp.allclose(phi, phi_ref, atol=2e-2, rtol=2e-2)

    print("KERNEL_OK")
</pallas_src>

<mosaic_0001>
module attributes {stable_mosaic.version = 11 : i64} {
  func.func @kernel(%arg0: i32, %arg1: memref<1x4x12x288xf32, #tpu.memory_space<vmem>>, %arg2: memref<3x8x12xf32, #tpu.memory_space<vmem>>, %arg3: memref<4x8x1xf32, #tpu.memory_space<vmem>>, %arg4: memref<1x8x256xf32, #tpu.memory_space<vmem>>, %arg5: memref<1x4x8x256xf32, #tpu.memory_space<vmem>>) attributes {dimension_semantics = [#tpu.dimension_semantics<parallel>], iteration_bounds = array<i64: 2>, scalar_prefetch = 0 : i64, scratch_operands = 0 : i64, tpu.core_type = #tpu.core_type<tc>, window_params = [{transform_indices = @transform_0, window_bounds = array<i64: 1, 4, 12, 288>}, {pipeline_mode = #tpu.pipeline_mode<synchronous>, transform_indices = @transform_1, window_bounds = array<i64: 3, 8, 12>}, {pipeline_mode = #tpu.pipeline_mode<synchronous>, transform_indices = @transform_2, window_bounds = array<i64: 4, 8, 1>}, {transform_indices = @transform_3, window_bounds = array<i64: 1, 8, 256>}, {transform_indices = @transform_4, window_bounds = array<i64: 1, 4, 8, 256>}]} {
    %c0 = arith.constant 0 : index
    %c0_0 = arith.constant 0 : index
    %c0_1 = arith.constant 0 : index
    %c0_2 = arith.constant 0 : index
    %0 = vector.load %arg1[%c0, %c0_0, %c0_1, %c0_2] : memref<1x4x12x288xf32, #tpu.memory_space<vmem>>, vector<1x1x12x288xf32>
    %1 = vector.shape_cast %0 : vector<1x1x12x288xf32> to vector<12x288xf32>
    %c0_3 = arith.constant 0 : index
    %c1 = arith.constant 1 : index
    %c0_4 = arith.constant 0 : index
    %c0_5 = arith.constant 0 : index
    %2 = vector.load %arg1[%c0_3, %c1, %c0_4, %c0_5] : memref<1x4x12x288xf32, #tpu.memory_space<vmem>>, vector<1x1x12x288xf32>
    %3 = vector.shape_cast %2 : vector<1x1x12x288xf32> to vector<12x288xf32>
    %c0_6 = arith.constant 0 : index
    %c2 = arith.constant 2 : index
    %c0_7 = arith.constant 0 : index
    %c0_8 = arith.constant 0 : index
    %4 = vector.load %arg1[%c0_6, %c2, %c0_7, %c0_8] : memref<1x4x12x288xf32, #tpu.memory_space<vmem>>, vector<1x1x12x288xf32>
    %5 = vector.shape_cast %4 : vector<1x1x12x288xf32> to vector<12x288xf32>
    %c0_9 = arith.constant 0 : index
    %c3 = arith.constant 3 : index
    %c0_10 = arith.constant 0 : index
    %c0_11 = arith.constant 0 : index
    %6 = vector.load %arg1[%c0_9, %c3, %c0_10, %c0_11] : memref<1x4x12x288xf32, #tpu.memory_space<vmem>>, vector<1x1x12x288xf32>
    %7 = vector.shape_cast %6 : vector<1x1x12x288xf32> to vector<12x288xf32>
    %8 = arith.mulf %1, %1 : vector<12x288xf32>
    %9 = arith.mulf %3, %3 : vector<12x288xf32>
    %10 = arith.addf %8, %9 : vector<12x288xf32>
    %11 = arith.mulf %5, %5 : vector<12x288xf32>
    %12 = arith.addf %10, %11 : vector<12x288xf32>
    %13 = arith.mulf %7, %7 : vector<12x288xf32>
    %14 = arith.addf %12, %13 : vector<12x288xf32>
    %15 = math.sqrt %14 : vector<12x288xf32>
    %16 = vector.extract_strided_slice %1 {offsets = [0, 0], sizes = [12, 256], strides = [1, 1]} : vector<12x288xf32> to vector<12x256xf32>
    %17 = vector.extract_strided_slice %3 {offsets = [0, 0], sizes = [12, 256], strides = [1, 1]} : vector<12x288xf32> to vector<12x256xf32>
    %18 = vector.extract_strided_slice %5 {offsets = [0, 0], sizes = [12, 256], strides = [1, 1]} : vector<12x288xf32> to vector<12x256xf32>
    %19 = vector.extract_strided_slice %7 {offsets = [0, 0], sizes = [12, 256], strides = [1, 1]} : vector<12x288xf32> to vector<12x256xf32>
    %20 = vector.extract_strided_slice %15 {offsets = [0, 0], sizes = [12, 256], strides = [1, 1]} : vector<12x288xf32> to vector<12x256xf32>
    %21 = tpu.concatenate %16, %17, %18, %19, %20 in 1 : vector<12x256xf32>, vector<12x256xf32>, vector<12x256xf32>, vector<12x256xf32>, vector<12x256xf32> -> vector<12x1280xf32>
    %c0_12 = arith.constant 0 : index
    %c0_13 = arith.constant 0 : index
    %c0_14 = arith.constant 0 : index
    %22 = vector.load %arg2[%c0_12, %c0_13, %c0_14] : memref<3x8x12xf32, #tpu.memory_space<vmem>>, vector<1x8x12xf32>
    %23 = vector.shape_cast %22 : vector<1x8x12xf32> to vector<8x12xf32>
    %cst = arith.constant dense<0.000000e+00> : vector<8x1280xf32>
    %24 = tpu.matmul %23, %21, %cst {dimension_numbers = #tpu.dot_dimension_numbers<[1], [0], [0], [1], [0, 0, 1, 1], [], []>} : vector<8x12xf32>, vector<12x1280xf32>, vector<8x1280xf32> -> vector<8x1280xf32>
    %25 = vector.extract_strided_slice %1 {offsets = [0, 16], sizes = [12, 256], strides = [1, 1]} : vector<12x288xf32> to vector<12x256xf32>
    %26 = vector.extract_strided_slice %3 {offsets = [0, 16], sizes = [12, 256], strides = [1, 1]} : vector<12x288xf32> to vector<12x256xf32>
    %27 = vector.extract_strided_slice %5 {offsets = [0, 16], sizes = [12, 256], strides = [1, 1]} : vector<12x288xf32> to vector<12x256xf32>
    %28 = vector.extract_strided_slice %7 {offsets = [0, 16], sizes = [12, 256], strides = [1, 1]} : vector<12x288xf32> to vector<12x256xf32>
    %29 = vector.extract_strided_slice %15 {offsets = [0, 16], sizes = [12, 256], strides = [1, 1]} : vector<12x288xf32> to vector<12x256xf32>
    %30 = tpu.concatenate %25, %26, %27, %28, %29 in 1 : vector<12x256xf32>, vector<12x256xf32>, vector<12x256xf32>, vector<12x256xf32>, vector<12x256xf32> -> vector<12x1280xf32>
    %c1_15 = arith.constant 1 : index
    %c0_16 = arith.constant 0 : index
    %c0_17 = arith.constant 0 : index
    %31 = vector.load %arg2[%c1_15, %c0_16, %c0_17] : memref<3x8x12xf32, #tpu.memory_space<vmem>>, vector<1x8x12xf32>
    %32 = vector.shape_cast %31 : vector<1x8x12xf32> to vector<8x12xf32>
    %cst_18 = arith.constant dense<0.000000e+00> : vector<8x1280xf32>
    %33 = tpu.matmul %32, %30, %cst_18 {dimension_numbers = #tpu.dot_dimension_numbers<[1], [0], [0], [1], [0, 0, 1, 1], [], []>} : vector<8x12xf32>, vector<12x1280xf32>, vector<8x1280xf32> -> vector<8x1280xf32>
    %34 = arith.addf %24, %33 : vector<8x1280xf32>
    %35 = vector.extract_strided_slice %1 {offsets = [0, 32], sizes = [12, 256], strides = [1, 1]} : vector<12x288xf32> to vector<12x256xf32>
    %36 = vector.extract_strided_slice %3 {offsets = [0, 32], sizes = [12, 256], strides = [1, 1]} : vector<12x288xf32> to vector<12x256xf32>
    %37 = vector.extract_strided_slice %5 {offsets = [0, 32], sizes = [12, 256], strides = [1, 1]} : vector<12x288xf32> to vector<12x256xf32>
    %38 = vector.extract_strided_slice %7 {offsets = [0, 32], sizes = [12, 256], strides = [1, 1]} : vector<12x288xf32> to vector<12x256xf32>
    %39 = vector.extract_strided_slice %15 {offsets = [0, 32], sizes = [12, 256], strides = [1, 1]} : vector<12x288xf32> to vector<12x256xf32>
    %40 = tpu.concatenate %35, %36, %37, %38, %39 in 1 : vector<12x256xf32>, vector<12x256xf32>, vector<12x256xf32>, vector<12x256xf32>, vector<12x256xf32> -> vector<12x1280xf32>
    %c2_19 = arith.constant 2 : index
    %c0_20 = arith.constant 0 : index
    %c0_21 = arith.constant 0 : index
    %41 = vector.load %arg2[%c2_19, %c0_20, %c0_21] : memref<3x8x12xf32, #tpu.memory_space<vmem>>, vector<1x8x12xf32>
    %42 = vector.shape_cast %41 : vector<1x8x12xf32> to vector<8x12xf32>
    %cst_22 = arith.constant dense<0.000000e+00> : vector<8x1280xf32>
    %43 = tpu.matmul %42, %40, %cst_22 {dimension_numbers = #tpu.dot_dimension_numbers<[1], [0], [0], [1], [0, 0, 1, 1], [], []>} : vector<8x12xf32>, vector<12x1280xf32>, vector<8x1280xf32> -> vector<8x1280xf32>
    %44 = arith.addf %34, %43 : vector<8x1280xf32>
    %c0_23 = arith.constant 0 : index
    %c0_24 = arith.constant 0 : index
    %c0_25 = arith.constant 0 : index
    %45 = vector.load %arg3[%c0_23, %c0_24, %c0_25] : memref<4x8x1xf32, #tpu.memory_space<vmem>>, vector<4x8x1xf32>
    %46 = vector.extract_strided_slice %44 {offsets = [0, 0], sizes = [8, 256], strides = [1, 1]} : vector<8x1280xf32> to vector<8x256xf32>
    %47 = vector.extract_strided_slice %45 {offsets = [0, 0, 0], sizes = [1, 8, 1], strides = [1, 1, 1]} : vector<4x8x1xf32> to vector<1x8x1xf32>
    %48 = vector.shape_cast %47 : vector<1x8x1xf32> to vector<8x1xf32>
    %49 = vector.broadcast %48 : vector<8x1xf32> to vector<8x256xf32>
    %50 = arith.addf %46, %49 : vector<8x256xf32>
    %c0_26 = arith.constant 0 : index
    %c0_27 = arith.constant 0 : index
    %c0_28 = arith.constant 0 : index
    %c0_29 = arith.constant 0 : index
    %51 = vector.load %arg5[%c0_26, %c0_27, %c0_28, %c0_29] : memref<1x4x8x256xf32, #tpu.memory_space<vmem>>, vector<1x1x8x256xf32>
    %52 = vector.shape_cast %51 : vector<1x1x8x256xf32> to vector<8x256xf32>
    %53 = vector.shape_cast %50 : vector<8x256xf32> to vector<1x1x8x256xf32>
    tpu.vector_store %arg5[%c0_26, %c0_27, %c0_28, %c0_29], %53 {strides = array<i32>} : memref<1x4x8x256xf32, #tpu.memory_space<vmem>>, vector<1x1x8x256xf32>,
    %54 = vector.extract_strided_slice %44 {offsets = [0, 256], sizes = [8, 256], strides = [1, 1]} : vector<8x1280xf32> to vector<8x256xf32>
    %55 = vector.extract_strided_slice %45 {offsets = [1, 0, 0], sizes = [1, 8, 1], strides = [1, 1, 1]} : vector<4x8x1xf32> to vector<1x8x1xf32>
    %56 = vector.shape_cast %55 : vector<1x8x1xf32> to vector<8x1xf32>
    %57 = vector.broadcast %56 : vector<8x1xf32> to vector<8x256xf32>
    %58 = arith.addf %54, %57 : vector<8x256xf32>
    %c0_30 = arith.constant 0 : index
    %c1_31 = arith.constant 1 : index
    %c0_32 = arith.constant 0 : index
    %c0_33 = arith.constant 0 : index
    %59 = vector.load %arg5[%c0_30, %c1_31, %c0_32, %c0_33] : memref<1x4x8x256xf32, #tpu.memory_space<vmem>>, vector<1x1x8x256xf32>
    %60 = vector.shape_cast %59 : vector<1x1x8x256xf32> to vector<8x256xf32>
    %61 = vector.shape_cast %58 : vector<8x256xf32> to vector<1x1x8x256xf32>
    tpu.vector_store %arg5[%c0_30, %c1_31, %c0_32, %c0_33], %61 {strides = array<i32>} : memref<1x4x8x256xf32, #tpu.memory_space<vmem>>, vector<1x1x8x256xf32>,
    %62 = vector.extract_strided_slice %44 {offsets = [0, 512], sizes = [8, 256], strides = [1, 1]} : vector<8x1280xf32> to vector<8x256xf32>
    %63 = vector.extract_strided_slice %45 {offsets = [2, 0, 0], sizes = [1, 8, 1], strides = [1, 1, 1]} : vector<4x8x1xf32> to vector<1x8x1xf32>
    %64 = vector.shape_cast %63 : vector<1x8x1xf32> to vector<8x1xf32>
    %65 = vector.broadcast %64 : vector<8x1xf32> to vector<8x256xf32>
    %66 = arith.addf %62, %65 : vector<8x256xf32>
    %c0_34 = arith.constant 0 : index
    %c2_35 = arith.constant 2 : index
    %c0_36 = arith.constant 0 : index
    %c0_37 = arith.constant 0 : index
    %67 = vector.load %arg5[%c0_34, %c2_35, %c0_36, %c0_37] : memref<1x4x8x256xf32, #tpu.memory_space<vmem>>, vector<1x1x8x256xf32>
    %68 = vector.shape_cast %67 : vector<1x1x8x256xf32> to vector<8x256xf32>
    %69 = vector.shape_cast %66 : vector<8x256xf32> to vector<1x1x8x256xf32>
    tpu.vector_store %arg5[%c0_34, %c2_35, %c0_36, %c0_37], %69 {strides = array<i32>} : memref<1x4x8x256xf32, #tpu.memory_space<vmem>>, vector<1x1x8x256xf32>,
    %70 = vector.extract_strided_slice %44 {offsets = [0, 768], sizes = [8, 256], strides = [1, 1]} : vector<8x1280xf32> to vector<8x256xf32>
    %71 = vector.extract_strided_slice %45 {offsets = [3, 0, 0], sizes = [1, 8, 1], strides = [1, 1, 1]} : vector<4x8x1xf32> to vector<1x8x1xf32>
    %72 = vector.shape_cast %71 : vector<1x8x1xf32> to vector<8x1xf32>
    %73 = vector.broadcast %72 : vector<8x1xf32> to vector<8x256xf32>
    %74 = arith.addf %70, %73 : vector<8x256xf32>
    %c0_38 = arith.constant 0 : index
    %c3_39 = arith.constant 3 : index
    %c0_40 = arith.constant 0 : index
    %c0_41 = arith.constant 0 : index
    %75 = vector.load %arg5[%c0_38, %c3_39, %c0_40, %c0_41] : memref<1x4x8x256xf32, #tpu.memory_space<vmem>>, vector<1x1x8x256xf32>
    %76 = vector.shape_cast %75 : vector<1x1x8x256xf32> to vector<8x256xf32>
    %77 = vector.shape_cast %74 : vector<8x256xf32> to vector<1x1x8x256xf32>
    tpu.vector_store %arg5[%c0_38, %c3_39, %c0_40, %c0_41], %77 {strides = array<i32>} : memref<1x4x8x256xf32, #tpu.memory_space<vmem>>, vector<1x1x8x256xf32>,
    %78 = vector.extract_strided_slice %44 {offsets = [0, 1024], sizes = [8, 256], strides = [1, 1]} : vector<8x1280xf32> to vector<8x256xf32>
    %79 = arith.mulf %50, %50 : vector<8x256xf32>
    %80 = arith.mulf %58, %58 : vector<8x256xf32>
    %81 = arith.addf %79, %80 : vector<8x256xf32>
    %82 = arith.mulf %66, %66 : vector<8x256xf32>
    %83 = arith.addf %81, %82 : vector<8x256xf32>
    %84 = arith.mulf %74, %74 : vector<8x256xf32>
    %85 = arith.addf %83, %84 : vector<8x256xf32>
    %86 = math.sqrt %85 : vector<8x256xf32>
    %cst_42 = arith.constant 5.000000e-01 : f32
    %87 = vector.broadcast %cst_42 : f32 to vector<8x256xf32>
    %88 = arith.mulf %87, %86 : vector<8x256xf32>
    %cst_43 = arith.constant 5.000000e-01 : f32
    %89 = vector.broadcast %cst_43 : f32 to vector<8x256xf32>
    %90 = arith.mulf %89, %78 : vector<8x256xf32>
    %91 = arith.addf %88, %90 : vector<8x256xf32>
    %c0_44 = arith.constant 0 : index
    %c0_45 = arith.constant 0 : index
    %c0_46 = arith.constant 0 : index
    %92 = vector.load %arg4[%c0_44, %c0_45, %c0_46] : memref<1x8x256xf32, #tpu.memory_space<vmem>>, vector<1x8x256xf32>
    %93 = vector.shape_cast %92 : vector<1x8x256xf32> to vector<8x256xf32>
    %94 = vector.shape_cast %91 : vector<8x256xf32> to vector<1x8x256xf32>
    tpu.vector_store %arg4[%c0_44, %c0_45, %c0_46], %94 {strides = array<i32>} : memref<1x8x256xf32, #tpu.memory_space<vmem>>, vector<1x8x256xf32>,
    return
  }
  func.func @transform_0(%arg0: i32) -> (i32, i32, i32, i32) {
    %c0_i32 = arith.constant 0 : i32
    %c0_i32_0 = arith.constant 0 : i32
    %c0_i32_1 = arith.constant 0 : i32
    %c0_i32_2 = arith.constant 0 : i32
    return %arg0, %c0_i32, %c0_i32_0, %c0_i32_1 : i32, i32, i32, i32
  }
  func.func @transform_1(%arg0: i32) -> (i32, i32, i32) {
    %c0_i32 = arith.constant 0 : i32
    %c0_i32_0 = arith.constant 0 : i32
    %c0_i32_1 = arith.constant 0 : i32
    %c0_i32_2 = arith.constant 0 : i32
    return %c0_i32, %c0_i32_0, %c0_i32_1 : i32, i32, i32
  }
  func.func @transform_2(%arg0: i32) -> (i32, i32, i32) {
    %c0_i32 = arith.constant 0 : i32
    %c0_i32_0 = arith.constant 0 : i32
    %c0_i32_1 = arith.constant 0 : i32
    %c0_i32_2 = arith.constant 0 : i32
    return %c0_i32, %c0_i32_0, %c0_i32_1 : i32, i32, i32
  }
  func.func @transform_3(%arg0: i32) -> (i32, i32, i32) {
    %c0_i32 = arith.constant 0 : i32
    %c0_i32_0 = arith.constant 0 : i32
    %c0_i32_1 = arith.constant 0 : i32
    return %arg0, %c0_i32, %c0_i32_0 : i32, i32, i32
  }
  func.func @transform_4(%arg0: i32) -> (i32, i32, i32, i32) {
    %c0_i32 = arith.constant 0 : i32
    %c0_i32_0 = arith.constant 0 : i32
    %c0_i32_1 = arith.constant 0 : i32
    %c0_i32_2 = arith.constant 0 : i32
    return %arg0, %c0_i32, %c0_i32_0, %c0_i32_1 : i32, i32, i32, i32
  }
}

</mosaic_0001>

<bundles_post_ra>
// kernel: tpu_custom_call.1
= control target key start
LH: loop header
LB: loop body
LE: loop exit
PB: predicated region body
PF: predicated region fallthrough
CT: control target
= control target key end

     0   :  { %10 = vsyncpa [#allocation3], 0  ;;  %s2414_s0 = inlined_call_operand.vmem [shape: f32[2,4,12,288], index: 0, kind: input, shape index: {}]   ;;  %s2415_s1 = inlined_call_operand.vmem [shape: f32[3,8,12], index: 1, kind: input, shape index: {}]   ;;  %s2416_s2 = inlined_call_operand.vmem [shape: f32[4,8,1], index: 2, kind: input, shape index: {}]   ;;  %s2417_s3 = inlined_call_operand.hbm [shape: f32[2,8,256], index: 3, kind: output, shape index: {0}]   ;;  %s2418_s4 = inlined_call_operand.hbm [shape: f32[2,4,8,256], index: 4, kind: output, shape index: {1}]  }
   0x1   :  { %12 = vsyncpa [#allocation3 + $0x1], 0 }
   0x2   :  { %13 = vsyncpa [#allocation5], 0 }
   0x3   :  { %15 = vsyncpa [#allocation5 + $0x1], 0  ;;  %s1834_s15 = smov 0   ;;  %s1836_s16 = smov 0  }
   0x4   :  { %s1838_s17 = smov 0   ;;  %s1840_s18 = smov 0  }
   0x5 LB: > { %s1855_s19 = sadd.s32 4294967295, %s1802_s18   ;;  %s1466_s20 = sadd.s32 4294967294, %s1802_s18   ;;  %s1802_s18 = sphi %s1840_s18, %s2424_s18   ;;  %s1798_s17 = sphi %s1838_s17, %s2423_s17   ;;  %s1794_s16 = sphi %s1836_s16, %s2422_s16   ;;  %s1790_s15 = sphi %s1834_s15, %s2421_s15  }
   0x6   : > { %s1859_s21 = sadd.s32 1, %s1802_s18   ;;  %s96_s22 = sadd.s32 1, %s1798_s17 }
   0x7   : > { %s93_s23 = ssub.s32 %s1802_s18, %s1859_s21  ;;  %p106_p0 = scmp.ne.s32.totalorder %s1798_s17, %s1794_s16 }
   0x8   : > { %p94_p1 = scmp.eq.s32.totalorder %s93_s23, 0  ;;  %p107_p2 = scmp.eq.s32.totalorder %s1855_s19, 1 }
   0x9   : > { %p112_p3 = scmp.ne.s32.totalorder %s1794_s16, %s1790_s15  ;;  %p113_p4 = scmp.eq.s32.totalorder %s1466_s20, 1 }
   0xa   : > { %s1870_s24 = scalar_select %p94_p1, %s1798_s17, %s96_s22  }
   0xb   : > { %p1872_p5 = por %p107_p2, %p106_p0  ;;  %p1876_p6 = por %p113_p4, %p112_p3 }
   0xc   : > { %p1469_p7 = scmp.ge.s32.totalorder %s1802_s18, 1  ;;  %p171_p8 = scmp.lt.s32.totalorder %s1802_s18, 3 }
   0xe   : > { %p172_p9 = pnand %p1469_p7, %p171_p8 }
   0xf   : > { %p202_p10 = scmp.lt.s32.totalorder (!%p172_p9), %s1855_s19, 1  ;;  %s1804_s6 = smov (!%p172_p9), 112  }
  0x10   : > { %175 = sbr.rel (%p172_p9) target bundleno = 415 (0x19f), region = 32  ;;  %s1805_s7 = smov (!%p172_p9), 96  }
  0x11   : > { %s1568_s8 = sshll.u32 (!%p172_p9), %s1855_s19, 6 }
  0x12   : > { %s1367_s11 = scalar_lea.hbm (!%p172_p9), %s2418_s4, %s1568_s8 }
  0x13   : > { %s1370_s13 = sshll.u32 (!%p172_p9), %s1367_s11, 4  ;;  %s2360_s13 = int_to_ptr.hbm [resolvable:$true] %s1370_s13 }
  0x14   : > { %s1722_s20 = sshra.s32 (!%p172_p9), %s2360_s13, 4  ;;  %s1723_s20 = int_to_ptr.hbm [resolvable:$true] %s1722_s20 }
  0x15   : > { %s203_s27 = scalar_select %p202_p10, %s1855_s19, 1  ;;  %vm367_vm12 = vcmask 916480   ;;  %vm476_vm13 = vcmask 1043456   ;;  %vm472_vm14 = vcmask 97280   ;;  %vm932_vm15 = vcmask 785408  }
  0x16   : > { %s1724_s22 = scalar_lea.hbm %s1723_s20, 64  ;;  %p1729_p0 = scmp.lt.s32.totalorder %s1723_s20, %s2418_s4 }
  0x17   : > { %s1569_s28 = smul.u32 192, %s203_s27  ;;  %p1725_p11 = scmp.ne.s32.totalorder %s1723_s20, %s1724_s22 }
  0x19   : > { %s1887_s5 = scalar_lea.vmem %s2414_s0, %s1569_s28  ;;  %p1726_p12 = pnand %p1725_p11, %p1872_p5 }
  0x1a   : > { %v1890_v0 = vld [vmem:[%s1887_s5 + $0x58] sm:$0xf]  ;;  %v1893_v1 = vld [vmem:[%s1887_s5 + $0x48] sm:$0xf]  ;;  %v1896_v2 = vld [vmem:[%s1887_s5 + $0x50] sm:$0xf] }
  0x1b   : > { %390 = vrot.lane.b32.xlu1 %v1890_v0, %s1804_s6  ;;  %386 = vrot.lane.b32.xlu0 %v1893_v1, %s1804_s6  ;;  %v1903_v3 = vld [vmem:[%s1887_s5 + $0x30] sm:$0xff]  ;;  %v1906_v4 = vld [vmem:[%s1887_s5 + $0x38] sm:$0xff]  ;;  %v245_v5 = vmul.f32 %v1890_v0, %v1890_v0  ;;  %v243_v6 = vmul.f32 %v1893_v1, %v1893_v1  ;;  %v244_v11 = vmul.f32 %v1896_v2, %v1896_v2  ;;  %p1727_p13 = pneg %p1726_p12  ;;  %s1728_s28 = scalar_lea.hbm %s2418_s4, 128 }
  0x1c   : > { %v240_v7 = vmul.f32 %v1903_v3, %v1903_v3  ;;  %v1915_v8 = vld [vmem:[%s1887_s5 + $0x28] sm:$0xf]  ;;  %v1918_v9 = vld [vmem:[%s1887_s5 + $0x20] sm:$0xf]  ;;  %v1933_v16 = vld [vmem:[%s1887_s5 + $0xb0] sm:$0xf]  ;;  %v241_v18 = vmul.f32 %v1906_v4, %v1906_v4  ;;  %v1954_v23 = vpack.i.bf16 %v1906_v4, %v1903_v3  ;;  %p1730_p1 = scmp.lt.s32.totalorder %s1728_s28, %s1724_s22 }
  0x1d   : > { %v1921_v10 = vld [vmem:[%s1887_s5] sm:$0xff]  ;;  %v239_v12 = vmul.f32 %v1915_v8, %v1915_v8  ;;  %v238_v13 = vmul.f32 %v1918_v9, %v1918_v9  ;;  %v1936_v17 = vld [vmem:[%s1887_s5 + $0xa8] sm:$0xf]  ;;  %v1944_v20 = vld [vmem:[%s1887_s5 + $0x18] sm:$0xf]  ;;  %v268_v29 = vmul.f32 %v1933_v16, %v1933_v16 }
  0x1e   : > { %v1475_v14 = vld [vmem:[%s1887_s5 + $0x40] sm:$0xff]  ;;  %v234_v15 = vmul.f32 %v1921_v10, %v1921_v10  ;;  %v1947_v21 = vld [vmem:[%s1887_s5 + $0x78] sm:$0xf]  ;;  %v237_v26 = vmul.f32 %v1944_v20, %v1944_v20  ;;  %v1962_v28 = vld [vmem:[%s1887_s5 + $0x90] sm:$0xff]  ;;  %v267_v30 = vmul.f32 %v1936_v17, %v1936_v17  ;;  %p1731_p2 = por %p1730_p1, %p1729_p0 }
  0x1f   : > { %v1941_v19 = vpack.i.bf16 %v1921_v10, %v1475_v14  ;;  %v1950_v22 = vld [vmem:[%s1887_s5 + $0x60] sm:$0xff]  ;;  %v242_v24 = vmul.f32 %v1475_v14, %v1475_v14  ;;  %v255_v31 = vmul.f32 %v1947_v21, %v1947_v21  ;;  %v1975_v33 = vld [vmem:[%s1887_s5 + $0x8] sm:$0xff]  ;;  %v209_v34 = vld [vmem:[%s1887_s5 + $0x10] sm:$0xff]  ;;  %v251_v36 = vadd.f32 %v245_v5, %v239_v12 }
  0x20   : > { %v246_v25 = vadd.f32 %v240_v7, %v234_v15  ;;  %v1959_v27 = vld [vmem:[%s1887_s5 + $0xa0] sm:$0xff]  ;;  %v252_v32 = vmul.f32 %v1950_v22, %v1950_v22  ;;  %v1979_v35 = vld [vmem:[%s1887_s5 + $0x68] sm:$0xff]  ;;  %v250_v37 = vadd.f32 %v244_v11, %v238_v13  ;;  %v249_v38 = vadd.f32 %v243_v6, %v237_v26  ;;  %v1984_v40 = vld [vmem:[%s1887_s5 + $0x70] sm:$0xff]  ;;  %p1732_p3 = pnand %p1731_p2, %p1727_p13 }
  0x21   : > { %1625 = vrot.lane.b32.xlu2 %v1941_v19, %s1804_s6  ;;  %v264_v39 = vmul.f32 %v1962_v28, %v1962_v28  ;;  %v1987_v41 = vld [vmem:[%s1887_s5 + $0x80] sm:$0xf]  ;;  %v266_v42 = vmul.f32 %v1959_v27, %v1959_v27  ;;  %v1992_v44 = vld [vmem:[%s1887_s5 + $0x98] sm:$0xff]  ;;  %v236_v45 = vmul.f32 %v209_v34, %v209_v34  ;;  %v254_v46 = vmul.f32 %v1984_v40, %v1984_v40  ;;  %v2005_v50 = vld [vmem:[%s1887_s5 + $0x88] sm:$0xf] }
  0x22   : > { %v258_v43 = vadd.f32 %v252_v32, %v246_v25  ;;  %v261_v47 = vadd.f32 %v255_v31, %v249_v38  ;;  %v253_v48 = vmul.f32 %v1979_v35, %v1979_v35  ;;  %v235_v49 = vmul.f32 %v1975_v33, %v1975_v33  ;;  %v2019_v61 = vld [vmem:[%s1887_s5 + $0xb8] sm:$0xf]  ;;  %s2340_s5 = sand.u32 1, %s1794_s16  }
  0x23   : > { %388 = vrot.lane.b32.xlu0 %v1896_v2, %s1804_s6  ;;  %1620 = vrot.lane.b32.xlu1 %v1954_v23, %s1804_s6  ;;  %v248_v52 = vadd.f32 %v242_v24, %v236_v45  ;;  %v257_v53 = vmul.f32 %v2005_v50, %v2005_v50  ;;  %v256_v54 = vmul.f32 %v1987_v41, %v1987_v41  ;;  %s1341_s14 = scalar_lea.sflag [#allocation5], %s2340_s5 }
  0x24   : > { %v2007_v51 = vadd.f32 %v264_v39, %v258_v43  ;;  %v2013_v55 = vadd.f32 %v267_v30, %v261_v47  ;;  %v265_v56 = vmul.f32 %v1992_v44, %v1992_v44  ;;  %v247_v57 = vadd.f32 %v241_v18, %v235_v49 }
  0x25   : > { %v260_v58 = vadd.f32 %v254_v46, %v248_v52  ;;  %v262_v59 = vadd.f32 %v256_v54, %v250_v37  ;;  %v263_v63 = vadd.f32 %v257_v53, %v251_v36  ;;  %v269_v6 = vmul.f32 %v2019_v61, %v2019_v61 }
  0x26   : > { %1692 = vrsqrt.f32 %v2007_v51  ;;  %v259_v60 = vadd.f32 %v253_v48, %v247_v57  ;;  %v2039_v12 = vpack.i.bf16 %v209_v34, %v1975_v33  ;;  %v2058_v43 = vpack.i.bf16 %v1950_v22, %v1959_v27 }
  0x27   : > { %1694 = vrsqrt.f32 %v2013_v55  ;;  %v2024_v62 = vadd.f32 %v266_v42, %v260_v58  ;;  %v2026_v5 = vadd.f32 %v268_v29, %v262_v59  ;;  %v2041_v13 = vadd.f32 %v269_v6, %v263_v63 }
  0x28   : > { %v2030_v7 = vadd.f32 %v265_v56, %v259_v60  ;;  %v2062_v45 = vpack.i.bf16 %v1992_v44, %v1962_v28  ;;  %vm319_vm1 = vcmp.eq.f32.partialorder %v2013_v55, inf  ;;  %vm321_vm2 = vcmp.eq.f32.partialorder %v2013_v55, 0.0 }
  0x29   : > { %361 = vrot.lane.b32.xlu2 %v1944_v20, %s1804_s6  ;;  %1696 = vrsqrt.f32 %v2026_v5  ;;  %vm331_vm0 = vcmp.eq.f32.partialorder %v2026_v5, inf  ;;  %vm333_vm3 = vcmp.eq.f32.partialorder %v2026_v5, 0.0  ;;  %vm283_vm4 = vcmp.eq.f32.partialorder %v2007_v51, inf }
  0x2a   : > { %1698 = vrsqrt.f32 %v2024_v62  ;;  %vm295_vm5 = vcmp.eq.f32.partialorder %v2030_v7, inf  ;;  %vm285_vm6 = vcmp.eq.f32.partialorder %v2007_v51, 0.0  ;;  %vm343_vm7 = vcmp.eq.f32.partialorder %v2041_v13, inf }
  0x2b   : > { %365 = vrot.lane.b32.xlu1 %v1915_v8, %s1804_s6  ;;  %363 = vrot.lane.b32.xlu0 %v1918_v9, %s1804_s6  ;;  %1700 = vrsqrt.f32 %v2030_v7  ;;  %vm297_vm8 = vcmp.eq.f32.partialorder %v2030_v7, 0.0  ;;  %vm307_vm9 = vcmp.eq.f32.partialorder %v2024_v62, inf  ;;  %vm345_vm10 = vcmp.eq.f32.partialorder %v2041_v13, 0.0 }
  0x2c   : > { %v1693_v11 = vpop.eup %1692  ;;  %1702 = vrsqrt.f32 %v2041_v13  ;;  %vm309_vm11 = vcmp.eq.f32.partialorder %v2024_v62, 0.0 }
  0x2d   : > { %v1695_v14 = vpop.eup %1694  ;;  %v277_v25 = vmul.f32 %v1693_v11, %v2007_v51 }
  0x2e   : > { %v313_v15 = vmul.f32 %v1695_v14, %v2013_v55 }
  0x2f   : > { %v1697_v18 = vpop.eup %1696  ;;  %v278_v36 = vmul.f32 %v1693_v11, %v277_v25 }
  0x30   : > { %v314_v24 = vmul.f32 %v1695_v14, %v313_v15  ;;  %v1699_v26 = vpop.eup %1698  ;;  %v325_v29 = vmul.f32 %v1697_v18, %v2026_v5 }
  0x31   : > { %1630 = vrot.lane.b32.xlu2 %v2039_v12, %s1804_s6  ;;  %v1701_v30 = vpop.eup %1700  ;;  %v301_v38 = vmul.f32 %v1699_v26, %v2024_v62  ;;  %v279_v48 = vmul.f32 0.5, %v278_v36 }
  0x32   : > { %v326_v31 = vmul.f32 %v1697_v18, %v325_v29  ;;  %v289_v32 = vmul.f32 %v1701_v30, %v2030_v7  ;;  %v315_v34 = vmul.f32 0.5, %v314_v24  ;;  %v1703_v42 = vpop.eup %1702 }
  0x33   : > { %436 = vrot.lane.b32.xlu1 %v1933_v16, %s1804_s6  ;;  %434 = vrot.lane.b32.xlu0 %v1936_v17, %s1804_s6  ;;  %v337_v46 = vmul.f32 %v1703_v42, %v2041_v13  ;;  %v302_v52 = vmul.f32 %v1699_v26, %v301_v38  ;;  %v280_v56 = vsub.f32 1.5, %v279_v48  ;;  %v346_v48 = vand.u32 2147483648, %v2041_v13 }
  0x34   : > { %v327_v37 = vmul.f32 0.5, %v326_v31  ;;  %v290_v39 = vmul.f32 %v1701_v30, %v289_v32  ;;  %v316_v47 = vsub.f32 1.5, %v315_v34 }
  0x35   : > { %v338_v54 = vmul.f32 %v1703_v42, %v337_v46  ;;  %v303_v59 = vmul.f32 0.5, %v302_v52  ;;  %v281_v6 = vmul.f32 %v1693_v11, %v280_v56  ;;  %v322_v11 = vand.u32 2147483648, %v2013_v55 }
  0x36   : > { %v328_v49 = vsub.f32 1.5, %v327_v37  ;;  %v291_v53 = vmul.f32 0.5, %v290_v39  ;;  %v317_v58 = vmul.f32 %v1695_v14, %v316_v47  ;;  %v334_v14 = vand.u32 2147483648, %v2026_v5 }
  0x37   : > { %v339_v27 = vmul.f32 0.5, %v338_v54  ;;  %v304_v25 = vsub.f32 1.5, %v303_v59  ;;  %v286_v39 = vand.u32 2147483648, %v2007_v51 }
  0x38   : > { %v329_v57 = vmul.f32 %v1697_v18, %v328_v49  ;;  %v292_v60 = vsub.f32 1.5, %v291_v53  ;;  %v318_v24 = vmul.f32 %v317_v58, %v2013_v55  ;;  %v282_v18 = vmul.f32 %v281_v6, %v2007_v51  ;;  %v2157_v58 = vld [vmem:[%s2415_s1 + $0x8] sm:$0xff] }
  0x39   : > { %438 = vrot.lane.b32.xlu2 %v2019_v61, %s1804_s6  ;;  %v340_v63 = vsub.f32 1.5, %v339_v27  ;;  %v305_v36 = vmul.f32 %v1699_v26, %v304_v25  ;;  %v298_v26 = vand.u32 2147483648, %v2030_v7  ;;  %v310_v49 = vand.u32 2147483648, %v2024_v62 }
  0x3a   : > { %v330_v15 = vmul.f32 %v329_v57, %v2026_v5  ;;  %v293_v29 = vmul.f32 %v1701_v30, %v292_v60  ;;  %v1644_v30 = vpack.i.bf16 %v1984_v40, %v1979_v35  ;;  %v320_v34 = vsel %vm319_vm1, %v2013_v55, %v318_v24 }
  0x3b   : > { %1640 = vrot.lane.b32.xlu1 %v2058_v43, %s1804_s6  ;;  %1635 = vrot.lane.b32.xlu0 %v2062_v45, %s1804_s6  ;;  %v341_v31 = vmul.f32 %v1703_v42, %v340_v63  ;;  %v306_v42 = vmul.f32 %v305_v36, %v2024_v62  ;;  %v284_v46 = vsel %vm283_vm4, %v2007_v51, %v282_v18 }
  0x3c   : > { %v332_v32 = vsel %vm331_vm0, %v2026_v5, %v330_v15  ;;  %v294_v37 = vmul.f32 %v293_v29, %v2030_v7  ;;  %v2101_v5 = vsel %vm321_vm2, %v322_v11, %v320_v34  ;;  %v2120_v52 = vsel %vm285_vm6, %v286_v39, %v284_v46 }
  0x3d   : > { %v342_v38 = vmul.f32 %v341_v31, %v2041_v13  ;;  %v2097_v40 = vsel %vm333_vm3, %v334_v14, %v332_v32  ;;  %v308_v53 = vsel %vm307_vm9, %v2024_v62, %v306_v42 }
  0x3e   : > { %v296_v47 = vsel %vm295_vm5, %v2030_v7, %v294_v37  ;;  %v311_v27 = vsel %vm309_vm11, %v310_v49, %v308_v53 }
  0x3f   : > { %v344_v55 = vsel %vm343_vm7, %v2041_v13, %v342_v38  ;;  %v2122_v7 = vsel %vm297_vm8, %v298_v26, %v296_v47 }
  0x40   : > { %v347_v54 = vsel %vm345_vm10, %v346_v48, %v344_v55  ;;  %v1649_v13 = vpack.i.bf16 %v2122_v7, %v2120_v52 }
  0x41   : > { %410 = vrot.lane.b32.xlu2 %v1947_v21, %s1804_s6 }
  0x43   : > { %414 = vrot.lane.b32.xlu1 %v2005_v50, %s1804_s6  ;;  %412 = vrot.lane.b32.xlu0 %v1987_v41, %s1804_s6 }
  0x49   : > { %1645 = vrot.lane.b32.xlu2 %v1644_v30, %s1804_s6 }
  0x4b   : > { %460 = vrot.lane.b32.xlu1 %v2097_v40, %s1804_s6  ;;  %458 = vrot.lane.b32.xlu0 %v2101_v5, %s1804_s6 }
  0x51   : > { %462 = vrot.lane.b32.xlu2 %v347_v54, %s1804_s6 }
  0x53   : > { %456 = vrot.lane.b32.xlu1 %v311_v27, %s1804_s6  ;;  %1650 = vrot.lane.b32.xlu0 %v1649_v13, %s1804_s6  ;;  %s1471_s6 = sshll.u32 %s2340_s5, 6 }
  0x59   : > { %945 = vrot.lane.b32.xlu2 %v1893_v1, %s1805_s7 }
  0x5b   : > { %949 = vrot.lane.b32.xlu1 %v1890_v0, %s1805_s7  ;;  %947 = vrot.lane.b32.xlu0 %v1896_v2, %s1805_s7 }
  0x61   : > { %1655 = vrot.lane.b32.xlu2 %v1954_v23, %s1805_s7 }
  0x63   : > { %926 = vrot.lane.b32.xlu1 %v1944_v20, %s1805_s7  ;;  %1660 = vrot.lane.b32.xlu0 %v1941_v19, %s1805_s7 }
  0x69   : > { %928 = vrot.lane.b32.xlu2 %v1918_v9, %s1805_s7 }
  0x6b   : > { %1665 = vrot.lane.b32.xlu1 %v2039_v12, %s1805_s7  ;;  %930 = vrot.lane.b32.xlu0 %v1915_v8, %s1805_s7 }
  0x71   : > { %981 = vrot.lane.b32.xlu2 %v1936_v17, %s1805_s7 }
  0x73   : > { %985 = vrot.lane.b32.xlu1 %v2019_v61, %s1805_s7  ;;  %983 = vrot.lane.b32.xlu0 %v1933_v16, %s1805_s7 }
  0x79   : > { %1670 = vrot.lane.b32.xlu2 %v2062_v45, %s1805_s7 }
  0x7b   : > { %v1626_v0 = vpop.permute.xlu2 %1625  ;;  %963 = vrot.lane.b32.xlu1 %v1947_v21, %s1805_s7  ;;  %1675 = vrot.lane.b32.xlu0 %v2058_v43, %s1805_s7 }
  0x7c   : > { %v1627_v62 = vunpack.i.l.bf16 %v1626_v0  ;;  %v1628_v15 = vunpack.i.h.bf16 %v1626_v0 }
  0x81   : > { %965 = vrot.lane.b32.xlu2 %v1987_v41, %s1805_s7 }
  0x83   : > { %v362_v19 = vpop.permute.xlu2 %361  ;;  %1680 = vrot.lane.b32.xlu1 %v1644_v30, %s1805_s7  ;;  %967 = vrot.lane.b32.xlu0 %v2005_v50, %s1805_s7 }
  0x89   : > { %999 = vrot.lane.b32.xlu2 %v2101_v5, %s1805_s7 }
  0x8b   : > { %v1631_v8 = vpop.permute.xlu2 %1630  ;;  %1001 = vrot.lane.b32.xlu0 %v2097_v40, %s1805_s7  ;;  %1003 = vrot.lane.b32.xlu1 %v347_v54, %s1805_s7 }
  0x8c   : > { %v1633_v63 = vunpack.i.h.bf16 %v1631_v8  ;;  %v1632_v24 = vunpack.i.l.bf16 %v1631_v8 }
  0x8d   : > { %v391_v23 = vpop.permute.xlu1 %390  ;;  %v387_v51 = vpop.permute.xlu0 %386 }
  0x8e   : > { %v369_v14 = vsel %vm367_vm12, %v1632_v24, %v1633_v63  ;;  %v368_v18 = vsel %vm367_vm12, %v1628_v15, %v1632_v24  ;;  %v1247_v63 = vld [vmem:[%s2416_s2 + $0x8] sm:$0xff] }
  0x91   : > { %1685 = vrot.lane.b32.xlu2 %v1649_v13, %s1805_s7 }
  0x93   : > { %v439_v61 = vpop.permute.xlu2 %438  ;;  %997 = vrot.lane.b32.xlu0 %v311_v27, %s1805_s7  ;;  %s2345_s7 = scalar_lea.vmem [#allocation4], %s1471_s6 }
  0x94   : > { %s1368_s12 = sshll.u32 %s2345_s7, 4  ;;  %s2358_s12 = int_to_ptr.vmem [resolvable:$true] %s1368_s12 }
  0x95   : > { %v389_v12 = vpop.permute.xlu0 %388  ;;  %v1621_v43 = vpop.permute.xlu1 %1620 }
  0x96   : > { %v1623_v45 = vunpack.i.h.bf16 %v1621_v43  ;;  %v1622_v56 = vunpack.i.l.bf16 %v1621_v43  ;;  %v394_v50 = vsel %vm367_vm12, %v387_v51, %v389_v12  ;;  %v395_v57 = vsel %vm367_vm12, %v389_v12, %v391_v23 }
  0x97   : > { %1496 = vmatpush.msk.msra.mxu2 %vm476_vm13, %v394_v50  ;;  %1498 = vmatpush.msk.msra.mxu3 %vm476_vm13, %v395_v57 }
  0x98   : > { %v393_v59 = vsel %vm367_vm12, %v1623_v45, %v1627_v62  ;;  %v392_v60 = vsel %vm367_vm12, %v1622_v56, %v1623_v45 }
  0x99   : > { %572 = vmatpush.msra.mxu3 %v393_v59  ;;  %552 = vmatpush.msra.mxu2 %v392_v60 }
  0x9a   : > { %1497 = vmatmul.msk.f32.vlgmr.msra.gmra.mxu2 %vm472_vm14, %v2157_v58  ;;  %1499 = vmatmul.msk.f32.vlgmr.msra.gmra.mxu3 %vm472_vm14, %v2157_v58 }
  0x9b   : > { %v411_v6 = vpop.permute.xlu2 %410 }
  0x9d   : > { %v366_v25 = vpop.permute.xlu1 %365  ;;  %v364_v29 = vpop.permute.xlu0 %363 }
  0x9e   : > { %v370_v31 = vsel %vm367_vm12, %v362_v19, %v364_v29  ;;  %v371_v11 = vsel %vm367_vm12, %v364_v29, %v366_v25 }
  0x9f   : > { %1492 = vmatpush.msk.msra.mxu0 %vm476_vm13, %v370_v31  ;;  %1494 = vmatpush.msk.msra.mxu1 %vm476_vm13, %v371_v11 }
  0xa1   : > { %512 = vmatpush.msra.mxu0 %v368_v18  ;;  %532 = vmatpush.msra.mxu1 %v369_v14 }
  0xa2   : > { %1493 = vmatmul.msk.f32.vlgmr.msra.gmra.mxu0 %vm472_vm14, %v2157_v58  ;;  %1495 = vmatmul.msk.f32.vlgmr.msra.gmra.mxu1 %vm472_vm14, %v2157_v58 }
  0xa3   : > { %v1646_v30 = vpop.permute.xlu2 %1645 }
  0xa4   : > { %v1648_v49 = vunpack.i.h.bf16 %v1646_v30  ;;  %v1647_v13 = vunpack.i.l.bf16 %v1646_v30 }
  0xa5   : > { %v437_v32 = vpop.permute.xlu1 %436  ;;  %v435_v34 = vpop.permute.xlu0 %434 }
  0xa6   : > { %v442_v36 = vsel %vm367_vm12, %v435_v34, %v437_v32  ;;  %v443_v37 = vsel %vm367_vm12, %v437_v32, %v439_v61 }
  0xa7   : > { %1504 = vmatpush.msk.msrb.mxu2 %vm476_vm13, %v442_v36  ;;  %1506 = vmatpush.msk.msrb.mxu3 %vm476_vm13, %v443_v37  ;;  %v1248_v37 = vld [vmem:[%s2416_s2 + $0x10] sm:$0xff] }
  0xab   : > { %v463_v38 = vpop.permute.xlu2 %462 }
  0xad   : > { %v1641_v39 = vpop.permute.xlu1 %1640  ;;  %v1636_v26 = vpop.permute.xlu0 %1635 }
  0xae   : > { %v1642_v42 = vunpack.i.l.bf16 %v1641_v39  ;;  %v1638_v46 = vunpack.i.h.bf16 %v1636_v26  ;;  %v1637_v47 = vunpack.i.l.bf16 %v1636_v26  ;;  %v1643_v54 = vunpack.i.h.bf16 %v1641_v39 }
  0xb0   : > { %v440_v48 = vsel %vm367_vm12, %v1637_v47, %v1638_v46  ;;  %v441_v55 = vsel %vm367_vm12, %v1638_v46, %v1642_v42 }
  0xb1   : > { %632 = vmatpush.msrb.mxu2 %v440_v48  ;;  %652 = vmatpush.msrb.mxu3 %v441_v55 }
  0xb2   : > { %1505 = vmatmul.msk.f32.vlgmr.msrb.gmra.mxu2 %vm472_vm14, %v2157_v58  ;;  %1507 = vmatmul.msk.f32.vlgmr.msrb.gmra.mxu3 %vm472_vm14, %v2157_v58 }
  0xb3   : > { %v946_v53 = vpop.permute.xlu2 %945  ;;  %1512 = vmatpush.msk.msra.mxu2 %vm476_vm13, %v1944_v20  ;;  %1514 = vmatpush.msk.msra.mxu3 %vm476_vm13, %v1918_v9  ;;  %v417_v20 = vsel %vm367_vm12, %v1647_v13, %v1648_v49  ;;  %v2203_v9 = vld [vmem:[%s2415_s1] sm:$0xff] }
  0xb5   : > { %v415_v27 = vpop.permute.xlu1 %414  ;;  %v413_v0 = vpop.permute.xlu0 %412  ;;  %735 = vmatpush.msra.mxu2 %v1921_v10  ;;  %755 = vmatpush.msra.mxu3 %v1975_v33  ;;  %v416_v10 = vsel %vm367_vm12, %v1643_v54, %v1647_v13 }
  0xb6   : > { %v418_v19 = vsel %vm367_vm12, %v411_v6, %v413_v0  ;;  %v419_v8 = vsel %vm367_vm12, %v413_v0, %v415_v27 }
  0xb7   : > { %1520 = vmatpush.msk.msrb.mxu2 %vm476_vm13, %v1947_v21  ;;  %1522 = vmatpush.msk.msrb.mxu3 %vm476_vm13, %v1987_v41 }
  0xb8   : > { %1500 = vmatpush.msk.msrb.mxu0 %vm476_vm13, %v418_v19  ;;  %1502 = vmatpush.msk.msrb.mxu1 %vm476_vm13, %v419_v8 }
  0xb9   : > { %815 = vmatpush.msrb.mxu2 %v1950_v22  ;;  %835 = vmatpush.msrb.mxu3 %v1979_v35 }
  0xba   : > { %592 = vmatpush.msrb.mxu0 %v416_v10  ;;  %612 = vmatpush.msrb.mxu1 %v417_v20 }
  0xbb   : > { %1513 = vmatmul.msk.f32.vlgmr.msra.gmra.mxu2 %vm472_vm14, %v2203_v9  ;;  %1501 = vmatmul.msk.f32.vlgmr.msrb.gmra.mxu0 %vm472_vm14, %v2157_v58  ;;  %v2212_v21 = vpop.permute.xlu2 %1655 }
  0xbc   : > { %1503 = vmatmul.msk.f32.vlgmr.msrb.gmra.mxu1 %vm472_vm14, %v2157_v58  ;;  %1515 = vmatmul.msk.f32.vlgmr.msra.gmra.mxu3 %vm472_vm14, %v2203_v9  ;;  %v1658_v62 = vunpack.i.h.bf16 %v2212_v21  ;;  %v1657_v12 = vunpack.i.l.bf16 %v2212_v21 }
  0xbd   : > { %1528 = vmatpush.msk.msra.mxu2 %vm476_vm13, %v2101_v5  ;;  %1530 = vmatpush.msk.msra.mxu3 %vm476_vm13, %v2097_v40  ;;  %v461_v22 = vpop.permute.xlu1 %460  ;;  %v459_v33 = vpop.permute.xlu0 %458 }
  0xbe   : > { %v466_v35 = vsel %vm367_vm12, %v459_v33, %v461_v22  ;;  %v467_v41 = vsel %vm367_vm12, %v461_v22, %v463_v38  ;;  %v951_v57 = vsel %vm932_vm15, %v1657_v12, %v1658_v62 }
  0xbf   : > { %895 = vmatpush.msra.mxu2 %v2120_v52  ;;  %915 = vmatpush.msra.mxu3 %v2122_v7 }
  0xc0   : > { %1508 = vmatpush.msk.msra.mxu0 %vm476_vm13, %v466_v35  ;;  %1510 = vmatpush.msk.msra.mxu1 %vm476_vm13, %v467_v41 }
  0xc3   : > { %1521 = vmatmul.msk.f32.vlgmr.msrb.gmra.mxu2 %vm472_vm14, %v2203_v9  ;;  %v2232_v40 = vpop.permute.xlu2 %928 }
  0xc4   : > { %1523 = vmatmul.msk.f32.vlgmr.msrb.gmra.mxu3 %vm472_vm14, %v2203_v9 }
  0xc5   : > { %v457_v5 = vpop.permute.xlu1 %456  ;;  %v1651_v23 = vpop.permute.xlu0 %1650 }
  0xc6   : > { %v1653_v51 = vunpack.i.h.bf16 %v1651_v23  ;;  %v1652_v61 = vunpack.i.l.bf16 %v1651_v23 }
  0xc8   : > { %v464_v52 = vsel %vm367_vm12, %v1652_v61, %v1653_v51  ;;  %v465_v7 = vsel %vm367_vm12, %v1653_v51, %v457_v5 }
  0xc9   : > { %672 = vmatpush.msra.mxu0 %v464_v52  ;;  %692 = vmatpush.msra.mxu1 %v465_v7 }
  0xca   : > { %1509 = vmatmul.msk.f32.vlgmr.msra.gmra.mxu0 %vm472_vm14, %v2157_v58  ;;  %1511 = vmatmul.msk.f32.vlgmr.msra.gmra.mxu1 %vm472_vm14, %v2157_v58 }
  0xcb   : > { %1529 = vmatmul.msk.f32.vlgmr.msra.gmra.mxu2 %vm472_vm14, %v2203_v9  ;;  %1516 = vmatpush.msk.msrb.mxu0 %vm476_vm13, %v1893_v1  ;;  %v982_v1 = vpop.permute.xlu2 %981 }
  0xcc   : > { %1518 = vmatpush.msk.msrb.mxu1 %vm476_vm13, %v1896_v2  ;;  %1531 = vmatmul.msk.f32.vlgmr.msra.gmra.mxu3 %vm472_vm14, %v2203_v9  ;;  %v2262_v2 = vld [vmem:[%s2415_s1 + $0x10] sm:$0xff] }
  0xcd   : > { %v950_v43 = vpop.permute.xlu1 %949  ;;  %v948_v45 = vpop.permute.xlu0 %947  ;;  %775 = vmatpush.msrb.mxu0 %v1903_v3  ;;  %v1806_v3 = vmov 0  }
  0xce   : > { %v953_v56 = vsel %vm932_vm15, %v946_v53, %v948_v45  ;;  %v954_v50 = vsel %vm932_vm15, %v948_v45, %v950_v43  ;;  %795 = vmatpush.msrb.mxu1 %v1906_v4  ;;  %1689 = vset.pattern.permute.xlu1 %v1806_v3  ;;  %v1246_v4 = vld [vmem:[%s2416_s2] sm:$0xff] }
  0xcf   : > { %1524 = vmatpush.msk.msra.mxu0 %vm476_vm13, %v1936_v17  ;;  %1537 = vmatpush.msk.msrb.mxu2 %vm476_vm13, %v953_v56 }
  0xd0   : > { %1539 = vmatpush.msk.msrb.mxu3 %vm476_vm13, %v954_v50  ;;  %1526 = vmatpush.msk.msra.mxu1 %vm476_vm13, %v1933_v16 }
  0xd1   : > { %855 = vmatpush.msra.mxu0 %v1962_v28  ;;  %1091 = vmatpush.msrb.mxu2 %v951_v57 }
  0xd2   : > { %1517 = vmatmul.msk.f32.vlgmr.msrb.gmra.mxu0 %vm472_vm14, %v2203_v9  ;;  %1519 = vmatmul.msk.f32.vlgmr.msrb.gmra.mxu1 %vm472_vm14, %v2203_v9 }
  0xd3   : > { %1538 = vmatmul.msk.f32.vlgmr.msrb.gmra.mxu2 %vm472_vm14, %v2262_v2  ;;  %875 = vmatpush.msra.mxu1 %v1992_v44  ;;  %v1671_v60 = vpop.permute.xlu2 %1670  ;;  %v1249_v44 = vld [vmem:[%s2416_s2 + $0x18] sm:$0xff] }
  0xd4   : > { %1252 = vperm.xlu1 %1689, %v1246_v4   ;;  %1690 = vset.pattern.permute.xlu2 %v1806_v3  ;;  %v1673_v18 = vunpack.i.h.bf16 %v1671_v60  ;;  %v1672_v30 = vunpack.i.l.bf16 %v1671_v60 }
  0xd5   : > { %v927_v16 = vpop.permute.xlu1 %926  ;;  %v1661_v17 = vpop.permute.xlu0 %1660  ;;  %1691 = vset.pattern.permute.xlu0 %v1806_v3  ;;  %1261 = vperm.xlu2 %1690, %v1247_v63  }
  0xd6   : > { %v935_v28 = vsel %vm932_vm15, %v927_v16, %v2232_v40  ;;  %v1662_v58 = vunpack.i.l.bf16 %v1661_v17  ;;  %v1663_v24 = vunpack.i.h.bf16 %v1661_v17  ;;  %v987_v26 = vsel %vm932_vm15, %v1672_v30, %v1673_v18  ;;  %1271 = vperm.xlu0 %1691, %v1248_v37  }
  0xd7   : > { %1533 = vmatpush.msk.msrb.mxu0 %vm476_vm13, %v935_v28 }
  0xd8   : > { %v952_v59 = vsel %vm932_vm15, %v1658_v62, %v1662_v58 }
  0xd9   : > { %1111 = vmatpush.msrb.mxu3 %v952_v59 }
  0xda   : > { %1525 = vmatmul.msk.f32.vlgmr.msra.gmra.mxu0 %vm472_vm14, %v2203_v9  ;;  %1527 = vmatmul.msk.f32.vlgmr.msra.gmra.mxu1 %vm472_vm14, %v2203_v9 }
  0xdb   : > { %1540 = vmatmul.msk.f32.vlgmr.msrb.gmra.mxu3 %vm472_vm14, %v2262_v2  ;;  %v966_v32 = vpop.permute.xlu2 %965 }
  0xdc   : > { %1281 = vperm.xlu1 %1689, %v1249_v44  }
  0xdd   : > { %v1666_v6 = vpop.permute.xlu1 %1665  ;;  %v931_v15 = vpop.permute.xlu0 %930 }
  0xde   : > { %v1668_v25 = vunpack.i.h.bf16 %v1666_v6  ;;  %v1667_v29 = vunpack.i.l.bf16 %v1666_v6  ;;  %v936_v31 = vsel %vm932_vm15, %v2232_v40, %v931_v15 }
  0xdf   : > { %1535 = vmatpush.msk.msrb.mxu1 %vm476_vm13, %v936_v31 }
  0xe0   : > { %v933_v11 = vsel %vm932_vm15, %v1663_v24, %v1667_v29  ;;  %v934_v14 = vsel %vm932_vm15, %v1667_v29, %v1668_v25 }
  0xe1   : > { %1051 = vmatpush.msrb.mxu0 %v933_v11  ;;  %1071 = vmatpush.msrb.mxu1 %v934_v14 }
  0xe2   : > { %1534 = vmatmul.msk.f32.vlgmr.msrb.gmra.mxu0 %vm472_vm14, %v2262_v2  ;;  %1536 = vmatmul.msk.f32.vlgmr.msrb.gmra.mxu1 %vm472_vm14, %v2262_v2 }
  0xe3   : > { %v1000_v42 = vpop.permute.xlu2 %999 }
  0xe5   : > { %v986_v34 = vpop.permute.xlu1 %985  ;;  %v984_v36 = vpop.permute.xlu0 %983 }
  0xe6   : > { %v989_v38 = vsel %vm932_vm15, %v982_v1, %v984_v36  ;;  %v990_v39 = vsel %vm932_vm15, %v984_v36, %v986_v34 }
  0xe7   : > { %1545 = vmatpush.msk.msra.mxu2 %vm476_vm13, %v989_v38  ;;  %1547 = vmatpush.msk.msra.mxu3 %vm476_vm13, %v990_v39 }
  0xe9   : > { %1171 = vmatpush.msra.mxu2 %v987_v26 }
  0xea   : > { %1546 = vmatmul.msk.f32.vlgmr.msra.gmra.mxu2 %vm472_vm14, %v2262_v2 }
  0xeb   : > { %v1686_v8 = vpop.permute.xlu2 %1685 }
  0xec   : > { %v1688_v10 = vunpack.i.h.bf16 %v1686_v8  ;;  %v1687_v21 = vunpack.i.l.bf16 %v1686_v8 }
  0xed   : > { %v964_v46 = vpop.permute.xlu1 %963  ;;  %v1676_v47 = vpop.permute.xlu0 %1675 }
  0xee   : > { %v971_v48 = vsel %vm932_vm15, %v964_v46, %v966_v32  ;;  %v1677_v55 = vunpack.i.l.bf16 %v1676_v47  ;;  %v1678_v13 = vunpack.i.h.bf16 %v1676_v47  ;;  %v1005_v41 = vsel %vm932_vm15, %v1687_v21, %v1688_v10 }
  0xef   : > { %1541 = vmatpush.msk.msra.mxu0 %vm476_vm13, %v971_v48 }
  0xf0   : > { %v988_v49 = vsel %vm932_vm15, %v1673_v18, %v1677_v55 }
  0xf1   : > { %1191 = vmatpush.msra.mxu3 %v988_v49 }
  0xf2   : > { %1548 = vmatmul.msk.f32.vlgmr.msra.gmra.mxu3 %vm472_vm14, %v2262_v2 }
  0xf5   : > { %v1681_v53 = vpop.permute.xlu1 %1680  ;;  %v968_v54 = vpop.permute.xlu0 %967 }
  0xf6   : > { %v1683_v27 = vunpack.i.h.bf16 %v1681_v53  ;;  %v1682_v0 = vunpack.i.l.bf16 %v1681_v53  ;;  %v972_v19 = vsel %vm932_vm15, %v966_v32, %v968_v54 }
  0xf7   : > { %1543 = vmatpush.msk.msra.mxu1 %vm476_vm13, %v972_v19 }
  0xf8   : > { %v969_v20 = vsel %vm932_vm15, %v1678_v13, %v1682_v0  ;;  %v970_v9 = vsel %vm932_vm15, %v1682_v0, %v1683_v27 }
  0xf9   : > { %1131 = vmatpush.msra.mxu0 %v969_v20  ;;  %1151 = vmatpush.msra.mxu1 %v970_v9 }
  0xfa   : > { %1542 = vmatmul.msk.f32.vlgmr.msra.gmra.mxu0 %vm472_vm14, %v2262_v2  ;;  %1544 = vmatmul.msk.f32.vlgmr.msra.gmra.mxu1 %vm472_vm14, %v2262_v2 }
  0xfd   : > { %v1002_v22 = vpop.permute.xlu0 %1001  ;;  %v1004_v33 = vpop.permute.xlu1 %1003 }
  0xfe   : > { %v1007_v35 = vsel %vm932_vm15, %v1000_v42, %v1002_v22  ;;  %v1008_v40 = vsel %vm932_vm15, %v1002_v22, %v1004_v33 }
  0xff   : > { %1549 = vmatpush.msk.msrb.mxu0 %vm476_vm13, %v1007_v35  ;;  %1551 = vmatpush.msk.msrb.mxu1 %vm476_vm13, %v1008_v40 }
 0x101   : > { %1211 = vmatpush.msrb.mxu0 %v1005_v41 }
 0x102   : > { %1550 = vmatmul.msk.f32.vlgmr.msrb.gmra.mxu0 %vm472_vm14, %v2262_v2 }
 0x105   : > { %v998_v5 = vpop.permute.xlu0 %997 }
 0x106   : > { %v1006_v23 = vsel %vm932_vm15, %v1688_v10, %v998_v5 }
 0x107   : > { %1231 = vmatpush.msrb.mxu1 %v1006_v23 }
 0x108   : > { %1552 = vmatmul.msk.f32.vlgmr.msrb.gmra.mxu1 %vm472_vm14, %v2262_v2 }
 0x11d   : > { %v554_v51 = vpop.f32.mrf.mxu2  ;;  %v574_v61 = vpop.f32.mrf.mxu3 }
 0x11f   : > { %v514_v52 = vpop.f32.mrf.mxu0  ;;  %v534_v7 = vpop.f32.mrf.mxu1 }
 0x12f   : > { %v1262_v44 = vpop.permute.xlu2 %1261 }
 0x135   : > { %v634_v62 = vpop.f32.mrf.mxu2  ;;  %v654_v12 = vpop.f32.mrf.mxu3 }
 0x138   : > { %v594_v43 = vpop.f32.mrf.mxu0 }
 0x139   : > { %v614_v56 = vpop.f32.mrf.mxu1 }
 0x13e   : > { %v737_v45 = vpop.f32.mrf.mxu2 }
 0x13f   : > { %v757_v50 = vpop.f32.mrf.mxu3  ;;  %v738_v29 = vadd.f32 %v737_v45, %v514_v52 }
 0x140   : > { %v758_v31 = vadd.f32 %v757_v50, %v534_v7 }
 0x146   : > { %v817_v57 = vpop.f32.mrf.mxu2  ;;  %v1253_v14 = vpop.permute.xlu1 %1252 }
 0x147   : > { %v674_v1 = vpop.f32.mrf.mxu0  ;;  %v2335_v3 = vpop.f32.mrf.mxu1  ;;  %v818_v53 = vadd.f32 %v817_v57, %v594_v43 }
 0x148   : > { %v837_v4 = vpop.f32.mrf.mxu3  ;;  %v1272_v27 = vpop.permute.xlu0 %1271 }
 0x149   : > { %v838_v54 = vadd.f32 %v837_v4, %v614_v56 }
 0x14e   : > { %v897_v16 = vpop.f32.mrf.mxu2  ;;  %v1282_v46 = vpop.permute.xlu1 %1281 }
 0x14f   : > { %v2337_v17 = vadd.f32 %v897_v16, %v674_v1  ;;  %v777_v2 = vpop.f32.mrf.mxu0  ;;  %v797_v28 = vpop.f32.mrf.mxu1 }
 0x150   : > { %v2342_v58 = vpop.f32.mrf.mxu3  ;;  %v778_v59 = vadd.f32 %v777_v2, %v554_v51  ;;  %v798_v25 = vadd.f32 %v797_v28, %v574_v61 }
 0x156   : > { %v1093_v60 = vpop.f32.mrf.mxu2 }
 0x157   : > { %v1238_v63 = vadd.f32 %v1093_v60, %v778_v59  ;;  %v857_v6 = vpop.f32.mrf.mxu0  ;;  %v877_v15 = vpop.f32.mrf.mxu1 }
 0x158   : > { %v858_v26 = vadd.f32 %v857_v6, %v634_v62  ;;  %v878_v55 = vadd.f32 %v877_v15, %v654_v12 }
 0x159   : > { %v1264_v24 = vadd.f32 %v1262_v44, %v1238_v63 }
 0x15b   : > { %1553 = vst [vmem:[%s2345_s7 + $0x10] sm:$0xff] %v1264_v24  ;;  %v1291_v22 = vmul.f32 %v1264_v24, %v1264_v24 }
 0x15e   : > { %v1113_v11 = vpop.f32.mrf.mxu3 }
 0x15f   : > { %v1239_v18 = vadd.f32 %v1113_v11, %v798_v25  ;;  %v1053_v30 = vpop.f32.mrf.mxu0  ;;  %v1073_v32 = vpop.f32.mrf.mxu1 }
 0x160   : > { %v1236_v34 = vadd.f32 %v1053_v30, %v738_v29  ;;  %v1237_v36 = vadd.f32 %v1073_v32, %v758_v31 }
 0x161   : > { %v1265_v37 = vadd.f32 %v1262_v44, %v1239_v18 }
 0x162   : > { %v1255_v38 = vadd.f32 %v1253_v14, %v1236_v34  ;;  %v1256_v39 = vadd.f32 %v1253_v14, %v1237_v36 }
 0x163   : > { %1554 = vst [vmem:[%s2345_s7 + $0x18] sm:$0xff] %v1265_v37  ;;  %v1292_v33 = vmul.f32 %v1265_v37, %v1265_v37 }
 0x164   : > { %1257 = vst [vmem:[%s2345_s7] sm:$0xff] %v1255_v38  ;;  %v1289_v0 = vmul.f32 %v1255_v38, %v1255_v38  ;;  %v1290_v20 = vmul.f32 %v1256_v39, %v1256_v39 }
 0x165   : > { %1258 = vst [vmem:[%s2345_s7 + $0x8] sm:$0xff] %v1256_v39 }
 0x166   : > { %v1293_v40 = vadd.f32 %v1291_v22, %v1289_v0  ;;  %v1294_v5 = vadd.f32 %v1292_v33, %v1290_v20 }
 0x16d   : > { %v1173_v42 = vpop.f32.mrf.mxu2 }
 0x16e   : > { %v1242_v47 = vadd.f32 %v1173_v42, %v858_v26 }
 0x170   : > { %v1284_v48 = vadd.f32 %v1282_v46, %v1242_v47 }
 0x172   : > { %1557 = vst [vmem:[%s2345_s7 + $0x30] sm:$0xff] %v1284_v48  ;;  %v1299_v61 = vmul.f32 %v1284_v48, %v1284_v48 }
 0x175   : > { %v1193_v49 = vpop.f32.mrf.mxu3 }
 0x176   : > { %v1243_v13 = vadd.f32 %v1193_v49, %v878_v55 }
 0x177   : > { %v1133_v19 = vpop.f32.mrf.mxu0  ;;  %v1153_v8 = vpop.f32.mrf.mxu1 }
 0x178   : > { %v1285_v9 = vadd.f32 %v1282_v46, %v1243_v13  ;;  %v1240_v10 = vadd.f32 %v1133_v19, %v818_v53  ;;  %v1241_v21 = vadd.f32 %v1153_v8, %v838_v54 }
 0x17a   : > { %1558 = vst [vmem:[%s2345_s7 + $0x38] sm:$0xff] %v1285_v9  ;;  %v1274_v35 = vadd.f32 %v1272_v27, %v1240_v10  ;;  %v1275_v41 = vadd.f32 %v1272_v27, %v1241_v21  ;;  %v1300_v52 = vmul.f32 %v1285_v9, %v1285_v9 }
 0x17c   : > { %1555 = vst [vmem:[%s2345_s7 + $0x20] sm:$0xff] %v1274_v35  ;;  %v1295_v23 = vmul.f32 %v1274_v35, %v1274_v35  ;;  %v1296_v51 = vmul.f32 %v1275_v41, %v1275_v41 }
 0x17d   : > { %1556 = vst [vmem:[%s2345_s7 + $0x28] sm:$0xff] %v1275_v41 }
 0x17e   : > { %v1297_v7 = vadd.f32 %v1295_v23, %v1293_v40  ;;  %v1298_v62 = vadd.f32 %v1296_v51, %v1294_v5 }
 0x17f   : > { %1735 = shalt.err (!%p1732_p3)
}
 0x180   : > { %s1807_s6 = smov 256   ;;  %s1808_s7 = smov 16   ;;  %v1301_v12 = vadd.f32 %v1299_v61, %v1297_v7  ;;  %v1302_v43 = vadd.f32 %v1300_v52, %v1298_v62  ;;  %v1213_v59 = vpop.f32.mrf.mxu0  ;;  %v918_v6 = vadd.f32 %v2342_v58, %v2335_v3 }
 0x181   : > { %1571 = dma.vmem_to_hbm [thread:$0]  (%p1872_p5), %s2358_s12, 1024, %s2360_s13, %s1341_s14, %s1807_s6, %s1807_s6, %s1808_s7   ;;  %v1244_v24 = vadd.f32 %v1213_v59, %v2337_v17 }
 0x182   : > { %1704 = vrsqrt.f32 %v1301_v12  ;;  %s1470_s8 = sshll.u32 %s2340_s5, 4  ;;  %s1567_s9 = sshll.u32 %s1855_s19, 4  ;;  %vm1310_vm0 = vcmp.eq.f32.partialorder %v1301_v12, inf  ;;  %v1313_v29 = vand.u32 2147483648, %v1301_v12  ;;  %vm1312_vm1 = vcmp.eq.f32.partialorder %v1301_v12, 0.0 }
 0x183   : > { %1706 = vrsqrt.f32 %v1302_v43  ;;  %s1352_s12 = scalar_lea.hbm %s2417_s3, %s1567_s9  ;;  %vm1322_vm2 = vcmp.eq.f32.partialorder %v1302_v43, inf  ;;  %v1325_v18 = vand.u32 2147483648, %v1302_v43  ;;  %vm1324_vm3 = vcmp.eq.f32.partialorder %v1302_v43, 0.0  ;;  %s194_s19 = scalar_lea.vmem [#allocation2], %s1470_s8 }
 0x184   : > { %v1329_v58 = vmul.f32 0.5, %v1244_v24  ;;  %s1354_s13 = sshll.u32 %s194_s19, 4  ;;  %s1356_s14 = sshll.u32 %s1352_s12, 4  ;;  %s1355_s13 = int_to_ptr.vmem [resolvable:$true] %s1354_s13  ;;  %s1357_s14 = int_to_ptr.hbm [resolvable:$true] %s1356_s14 }
 0x185   : > { %v1233_v63 = vpop.f32.mrf.mxu1  ;;  %s1336_s20 = scalar_lea.sflag [#allocation3], %s2340_s5  ;;  %s1750_s22 = sshra.s32 %s1357_s14, 4  ;;  %s1751_s22 = int_to_ptr.hbm [resolvable:$true] %s1750_s22 }
 0x186   : > { %v1245_v31 = vadd.f32 %v1233_v63, %v918_v6  ;;  %s1752_s23 = scalar_lea.hbm %s1751_s22, 16  ;;  %s1756_s29 = scalar_lea.hbm %s2417_s3, 32 }
 0x187   : > { %p1753_p4 = scmp.ne.s32.totalorder %s1751_s22, %s1752_s23  ;;  %p1757_p9 = scmp.lt.s32.totalorder %s1751_s22, %s2417_s3 }
 0x188   : > { %v1705_v45 = vpop.eup %1704  ;;  %v1330_v36 = vmul.f32 0.5, %v1245_v31  ;;  %p1758_p10 = scmp.lt.s32.totalorder %s1756_s29, %s1752_s23 }
 0x189   : > { %v1707_v56 = vpop.eup %1706  ;;  %v1304_v50 = vmul.f32 %v1705_v45, %v1301_v12  ;;  %p1754_p7 = pnand %p1753_p4, %p1872_p5 }
 0x18a   : > { %v1316_v57 = vmul.f32 %v1707_v56, %v1302_v43  ;;  %p1759_p11 = por %p1758_p10, %p1757_p9 }
 0x18b   : > { %v1305_v1 = vmul.f32 %v1705_v45, %v1304_v50  ;;  %p1755_p8 = pneg %p1754_p7 }
 0x18c   : > { %v1317_v4 = vmul.f32 %v1707_v56, %v1316_v57 }
 0x18d   : > { %v1306_v16 = vmul.f32 0.5, %v1305_v1  ;;  %p1760_p12 = pnand %p1759_p11, %p1755_p8 }
 0x18e   : > { %v1318_v2 = vmul.f32 0.5, %v1317_v4 }
 0x18f   : > { %v1307_v28 = vsub.f32 1.5, %v1306_v16 }
 0x190   : > { %v1319_v60 = vsub.f32 1.5, %v1318_v2 }
 0x191   : > { %v1308_v44 = vmul.f32 %v1705_v45, %v1307_v28 }
 0x192   : > { %v1320_v15 = vmul.f32 %v1707_v56, %v1319_v60 }
 0x193   : > { %v1309_v25 = vmul.f32 %v1308_v44, %v1301_v12 }
 0x194   : > { %v1321_v11 = vmul.f32 %v1320_v15, %v1302_v43 }
 0x195   : > { %v1311_v14 = vsel %vm1310_vm0, %v1301_v12, %v1309_v25 }
 0x196   : > { %v1314_v30 = vsel %vm1312_vm1, %v1313_v29, %v1311_v14  ;;  %v1323_v32 = vsel %vm1322_vm2, %v1302_v43, %v1321_v11 }
 0x197   : > { %v1327_v3 = vmul.f32 0.5, %v1314_v30  ;;  %v1326_v17 = vsel %vm1324_vm3, %v1325_v18, %v1323_v32 }
 0x198   : > { %v1328_v34 = vmul.f32 0.5, %v1326_v17 }
 0x199   : > { %v1331_v37 = vadd.f32 %v1329_v58, %v1327_v3 }
 0x19a   : > { %v1332_v38 = vadd.f32 %v1330_v36, %v1328_v34 }
 0x19b   : > { %1333 = vst [vmem:[%s194_s19] sm:$0xff] %v1331_v37 }
 0x19c   : > { %1334 = vst [vmem:[%s194_s19 + $0x8] sm:$0xff] %v1332_v38 }
 0x19d   : > { %1763 = shalt.err (!%p1760_p12)
}
 0x19e   : > { %1570 = dma.vmem_to_hbm [thread:$0]  (%p1872_p5), %s1355_s13, 256, %s1357_s14, %s1336_s20  }
 0x19f PF: > { %p1581_p13 = scmp.ge.s32.totalorder %s1802_s18, 2  ;;  %s1385_s5 = sand.u32 1, %s1790_s15  }
 0x1a0   : > { %s1386_s7 = scalar_lea.sflag [#allocation3], %s1385_s5 }
 0x1a1   : > { %p1575_p0 = pnand %p1581_p13, %p1876_p6 }
 0x1a3   : > { %p1576_p1 = pneg %p1575_p0 }
 0x1a5   : > { %1781 = dma.done.wait (%p1576_p1), %s1386_s7, 256  }
 0x1a6   : > { %1783 = vsyncadd (%p1576_p1), %s1386_s7, 4294967040  ;;  %s1396_s8 = scalar_lea.sflag [#allocation5], %s1385_s5 }
 0x1a7   : > { %1785 = dma.done.wait (%p1576_p1), %s1396_s8, 1024  }
 0x1a8   : > { %1787 = vsyncadd (%p1576_p1), %s1396_s8, 4294966272  ;;  %p18_p5 = scmp.ge.s32.totalorder %s1859_s21, 4   ;;  %s2421_s15 = smov %s1794_s16 }
 0x1a9   : > { %s2422_s16 = smov %s1798_s17  ;;  %s2423_s17 = smov %s1870_s24 }
 0x1aa   : > { %s2424_s18 = smov %s1859_s21  ;;  %20 = sbr.rel (!%p18_p5) target bundleno = 5 (0x5), region = 92 }
 0x1af   :  { %1402 = vsyncpa [#allocation3], 1 }
 0x1b0   :  { %1404 = vsyncpa [#allocation3 + $0x1], 1 }
 0x1b1   :  { %1405 = vsyncpa [#allocation5], 1 }
 0x1b2   :  { %1407 = vsyncpa [#allocation5 + $0x1], 1 }

</bundles_post_ra>
